<compile_context>
chip_gen: v7x
topology: tpu7x:2x2x1
jax: 0.10.0
libtpu: 0.0.40
codegen_flags: <defaults>
</compile_context>

<pallas_src>
import jax
import jax.numpy as jnp
from jax.experimental import pallas as pl
from jax.experimental.pallas import tpu as pltpu

# ---------------------------- problem sizes ---------------------------------
N = 2                  # batch
CIN = 3                # input channels (image-like, as a pretrained backbone expects)
H = W = 16             # spatial
HW = H * W             # 256
COUT = 16              # feature channels -> 16*16*16 = 4096 flattened
FLAT = COUT * H * W    # 4096, matches Linear(4096, 1)
KH = KW = 3            # conv kernel
K_RAW = KH * KW * CIN  # 27 (im2col contraction depth)
K_PAD = 32             # padded contraction depth; row/col 27 carries the conv bias


# ------------------- fused Pallas kernel: conv + ReLU + head -----------------
def fused_net_kernel(patches_ref, convw_ref, headw_ref, headb_ref, o_ref):
    """Fused Conv2d(3->16,k3,p1)+ReLU+Linear(4096,1); grid-less, VMEM-resident.

    patches_ref: (K_PAD, N*HW) f32  im2col patches, transposed (lane-dense);
                                    row 27 == 1.0 (bias carrier), rows 28..31 == 0.
    convw_ref:   (COUT, K_PAD) f32  conv weights, transposed; col 27 == conv bias.
    headw_ref:   (COUT, N*HW)  f32  Linear(4096,1) weights in (c, h*W+w) order,
                                    tiled across the N batch halves of the lanes.
    headb_ref:   (1, 1)        f32  Linear bias, in SMEM.
    o_ref:       (N, 1)        f32  output logits.
    """
    # Conv + folded bias as ONE lane-dense MXU GEMM: (16,32)@(32,512)->(16,512).
    feats = jnp.maximum(
        jnp.dot(convw_ref[...], patches_ref[...],
                preferred_element_type=jnp.float32),
        0.0)                                                     # (COUT, N*HW)

    # Linear(4096, 1): single VPU multiply, shared sublane reduce, then one
    # 256-lane reduce per batch half (lane slices are vreg-aligned at 256).
    prod = feats * headw_ref[...]                                # (COUT, N*HW)
    col = jnp.sum(prod, axis=0, keepdims=True)                   # (1, N*HW)
    parts = [jnp.sum(col[:, n * HW:(n + 1) * HW], axis=(0, 1), keepdims=True)
             for n in range(N)]                                  # N x (1, 1)
    # (N, 1) masked store; padding the output to 128 lanes would only add a
    # downstream slice op, so the single small store is kept.
    o_ref[...] = jnp.concatenate(parts, axis=0) + headb_ref[0, 0]


def _fused_call(patches_t, convw_t, headw_tiled, headb):
    vmem = lambda: pl.BlockSpec(memory_space=pltpu.MemorySpace.VMEM)
    smem = pl.BlockSpec(memory_space=pltpu.MemorySpace.SMEM)
    return pl.pallas_call(
        fused_net_kernel,
        out_shape=jax.ShapeDtypeStruct((N, 1), jnp.float32),
        in_specs=[vmem(), vmem(), vmem(), smem],
        out_specs=vmem(),
        compiler_params=pltpu.CompilerParams(
            # Let XLA fuse the im2col producer into the patches input of the
            # Pallas call (removes a 64 KB HBM write/read feeding the kernel).
            allow_input_fusion=[True, False, False, False]),
    )(patches_t, convw_t, headw_tiled, headb)


# ------------------------------- forward -------------------------------------
def net_forward(x_nchw, kernel_params):
    """x_nchw: (N, CIN, H, W) float32, like the PyTorch module's input."""
    convw_t, headw_tiled, headb = kernel_params

    # XLA glue (fusable into the kernel's input): NCHW->NHWC, pad=1, im2col
    # emitted directly in transposed (K, N*HW) order, bias row + zero K-pad.
    x_nhwc = jnp.transpose(x_nchw, (0, 2, 3, 1))                 # (N,H,W,CIN)
    x_pad = jnp.pad(x_nhwc, ((0, 0), (1, 1), (1, 1), (0, 0)))    # (N,H+2,W+2,CIN)
    cols = jnp.stack([x_pad[:, kh:kh + H, kw:kw + W, :]
                      for kh in range(KH) for kw in range(KW)],
                     axis=0)                                     # (9,N,H,W,CIN)
    patches_t = jnp.transpose(cols, (0, 4, 1, 2, 3)).reshape(K_RAW, N * HW)
    patches_t = jnp.concatenate(
        [patches_t,                                              # rows 0..26
         jnp.ones((1, N * HW), jnp.float32),                     # row 27: bias carrier
         jnp.zeros((K_PAD - K_RAW - 1, N * HW), jnp.float32)],   # rows 28..31
        axis=0)                                                  # (32, 512)

    return _fused_call(patches_t, convw_t, headw_tiled, headb)   # (N, 1)


# ---------------------------- parameter prep ----------------------------------
def init_params_torch_layout(key):
    """Parameters in PyTorch layouts: Conv2d (COUT,CIN,KH,KW), Linear (1,FLAT)."""
    k1, k2, k3, k4 = jax.random.split(key, 4)
    conv_w = jax.random.normal(k1, (COUT, CIN, KH, KW), jnp.float32) * 0.1
    conv_b = jax.random.normal(k2, (COUT,), jnp.float32) * 0.01
    out_w = jax.random.normal(k3, (1, FLAT), jnp.float32) * 0.02
    out_b = jax.random.normal(k4, (1,), jnp.float32) * 0.01
    return conv_w, conv_b, out_w, out_b


def prepare_params(torch_params):
    """One-time re-layout of the weights into kernel-friendly form (prep time)."""
    conv_w, conv_b, out_w, out_b = torch_params
    # conv: (COUT,CIN,KH,KW) -> (COUT, K) with K ordered ((kh*KW+kw)*CIN + cin),
    # bias folded into column 27, zero-padded to K_PAD=32.
    w = jnp.transpose(conv_w, (0, 2, 3, 1)).reshape(COUT, K_RAW)          # (16, 27)
    convw_t = jnp.concatenate(
        [w, conv_b.reshape(COUT, 1),
         jnp.zeros((COUT, K_PAD - K_RAW - 1), jnp.float32)], axis=1)      # (16, 32)
    # head: PyTorch's view(N,-1) flattens NCHW as c*HW + h*W + w, which is
    # exactly out_w.reshape(COUT, HW) for the kernel's (c, h*W+w) feature
    # layout; tile once across the N batch halves of the lane dimension.
    headw_tiled = jnp.tile(out_w.reshape(COUT, HW), (1, N))               # (16, 512)
    headb = out_b.reshape(1, 1)
    return convw_t, headw_tiled, headb


# --------------------------- pure-JAX reference --------------------------------
def reference_forward(x_nchw, torch_params):
    conv_w, conv_b, out_w, out_b = torch_params
    y = jax.lax.conv_general_dilated(
        x_nchw, conv_w, window_strides=(1, 1), padding=((1, 1), (1, 1)),
        dimension_numbers=("NCHW", "OIHW", "NCHW"))
    y = jnp.maximum(y + conv_b.reshape(1, COUT, 1, 1), 0.0)
    flat = y.reshape(x_nchw.shape[0], FLAT)
    return flat @ out_w.T + out_b


if __name__ == "__main__":
    key = jax.random.PRNGKey(0)
    kx, kp = jax.random.split(key)
    x = jax.random.normal(kx, (N, CIN, H, W), jnp.float32)   # NCHW like PyTorch

    torch_params = init_params_torch_layout(kp)
    kernel_params = prepare_params(torch_params)             # one-time re-layout

    y = jax.jit(net_forward)(x, kernel_params)
    jax.block_until_ready(y)
    assert y.shape == (N, 1) and y.dtype == jnp.float32

    y_ref = reference_forward(x, torch_params)
    assert jnp.allclose(y, y_ref, rtol=1e-2, atol=1e-2), (y, y_ref)

    print("KERNEL_OK")
</pallas_src>

<mosaic_0001>
module attributes {stable_mosaic.version = 11 : i64} {
  func.func @fused_net_kernel(%arg0: memref<32x512xf32, #tpu.memory_space<vmem>>, %arg1: memref<16x32xf32, #tpu.memory_space<vmem>>, %arg2: memref<16x512xf32, #tpu.memory_space<vmem>>, %arg3: memref<1x1xf32, #tpu.memory_space<smem>>, %arg4: memref<2x1xf32, #tpu.memory_space<vmem>>) attributes {dimension_semantics = [], scalar_prefetch = 0 : i64, scratch_operands = 0 : i64, tpu.core_type = #tpu.core_type<tc>} {
    %c0 = arith.constant 0 : index
    %c0_0 = arith.constant 0 : index
    %0 = vector.load %arg1[%c0, %c0_0] : memref<16x32xf32, #tpu.memory_space<vmem>>, vector<16x32xf32>
    %c0_1 = arith.constant 0 : index
    %c0_2 = arith.constant 0 : index
    %1 = vector.load %arg0[%c0_1, %c0_2] : memref<32x512xf32, #tpu.memory_space<vmem>>, vector<32x512xf32>
    %cst = arith.constant dense<0.000000e+00> : vector<16x512xf32>
    %2 = tpu.matmul %0, %1, %cst {dimension_numbers = #tpu.dot_dimension_numbers<[1], [0], [0], [1], [0, 0, 1, 1], [], []>} : vector<16x32xf32>, vector<32x512xf32>, vector<16x512xf32> -> vector<16x512xf32>
    %cst_3 = arith.constant 0.000000e+00 : f32
    %3 = vector.broadcast %cst_3 : f32 to vector<16x512xf32>
    %4 = arith.maximumf %2, %3 : vector<16x512xf32>
    %c0_4 = arith.constant 0 : index
    %c0_5 = arith.constant 0 : index
    %5 = vector.load %arg2[%c0_4, %c0_5] : memref<16x512xf32, #tpu.memory_space<vmem>>, vector<16x512xf32>
    %6 = arith.mulf %4, %5 : vector<16x512xf32>
    %cst_6 = arith.constant dense<0.000000e+00> : vector<512xf32>
    %7 = vector.multi_reduction <add>, %6, %cst_6 [0] : vector<16x512xf32> to vector<512xf32>
    %8 = vector.shape_cast %7 : vector<512xf32> to vector<1x512xf32>
    %9 = vector.extract_strided_slice %8 {offsets = [0, 0], sizes = [1, 256], strides = [1, 1]} : vector<1x512xf32> to vector<1x256xf32>
    %10 = vector.shape_cast %9 : vector<1x256xf32> to vector<1x1x256xf32>
    %cst_7 = arith.constant dense<0.000000e+00> : vector<1xf32>
    %11 = vector.multi_reduction <add>, %10, %cst_7 [1, 2] : vector<1x1x256xf32> to vector<1xf32>
    %12 = vector.shape_cast %11 : vector<1xf32> to vector<1x1x1xf32>
    %13 = vector.extract %12[0, 0, 0] : f32 from vector<1x1x1xf32>
    %14 = vector.broadcast %13 : f32 to vector<1x1xf32>
    %15 = vector.extract_strided_slice %8 {offsets = [0, 256], sizes = [1, 256], strides = [1, 1]} : vector<1x512xf32> to vector<1x256xf32>
    %16 = vector.shape_cast %15 : vector<1x256xf32> to vector<1x1x256xf32>
    %cst_8 = arith.constant dense<0.000000e+00> : vector<1xf32>
    %17 = vector.multi_reduction <add>, %16, %cst_8 [1, 2] : vector<1x1x256xf32> to vector<1xf32>
    %18 = vector.shape_cast %17 : vector<1xf32> to vector<1x1x1xf32>
    %19 = vector.extract %18[0, 0, 0] : f32 from vector<1x1x1xf32>
    %20 = vector.broadcast %19 : f32 to vector<1x1xf32>
    %21 = tpu.concatenate %14, %20 in 0 : vector<1x1xf32>, vector<1x1xf32> -> vector<2x1xf32>
    %c0_9 = arith.constant 0 : index
    %c0_10 = arith.constant 0 : index
    %22 = memref.load %arg3[%c0_9, %c0_10] : memref<1x1xf32, #tpu.memory_space<smem>>
    %23 = vector.broadcast %22 : f32 to vector<2x1xf32>
    %24 = arith.addf %21, %23 : vector<2x1xf32>
    %c0_11 = arith.constant 0 : index
    %c0_12 = arith.constant 0 : index
    %25 = vector.load %arg4[%c0_11, %c0_12] : memref<2x1xf32, #tpu.memory_space<vmem>>, vector<2x1xf32>
    tpu.vector_store %arg4[%c0_11, %c0_12], %24 {strides = array<i32>} : memref<2x1xf32, #tpu.memory_space<vmem>>, vector<2x1xf32>,
    return
  }
}

</mosaic_0001>

<bundles_post_ra>
// kernel: net_forward.2
= control target key start
LH: loop header
LB: loop body
LE: loop exit
PB: predicated region body
PF: predicated region fallthrough
CT: control target
= control target key end

     0   :  { %v658_v3 = vmov 0.0   ;;  %v270_v4 = vlaneseq  ;;  %vm368_vm1 = vcmask 261120   ;;  %vm581_vm2 = vcmask 1040384   ;;  %s805_s0 = inlined_call_operand.vmem [shape: f32[16,32], index: 0, kind: input, shape index: {}]   ;;  %s806_s1 = inlined_call_operand.vmem [shape: f32[16,512], index: 1, kind: input, shape index: {}]   ;;  %s807_s2 = inlined_call_operand.<no memory space> [shape: f32[1,1], index: 2, kind: input, shape index: {}]   ;;  %s808_s3 = inlined_call_operand.vmem [shape: f32[27,512], index: 3, kind: input, shape index: {}]   ;;  %s809_s4 = inlined_call_operand.<no memory space> [shape: f32[], index: 4, kind: input, shape index: {}]   ;;  %s810_s5 = inlined_call_operand.vmem [shape: f32[32], index: 5, kind: input, shape index: {}]   ;;  %s811_s6 = inlined_call_operand.vmem [shape: f32[32], index: 6, kind: input, shape index: {}]   ;;  %s812_s7 = inlined_call_operand.vmem [shape: f32[2,1], index: 7, kind: output, shape index: {}]  }
   0x1   :  { %v12_v0 = vstv %s809_s4  ;;  %v36_v1 = vld [vmem:[%s811_s6] ss:$0 sm:$0xff]  ;;  %439 = vmatprep.mubr.f32.mxu0 %v658_v3  ;;  %516 = vmatprep.mubr.f32.mxu1 %v658_v3  ;;  %v618_v9 = vld [vmem:[%s808_s3 + $0x8] sm:$0xff]  ;;  %v620_v11 = vld [vmem:[%s808_s3 + $0x18] sm:$0xff]  ;;  %vm612_vm3 = vcmask 1024  }
   0x2   :  { %v32_v2 = vld [vmem:[%s810_s5] ss:$0 sm:$0xff]  ;;  %38 = vbcast.lane.b32.xlu0 %v36_v1, 256  ;;  %v271_v5 = vshrl.u32 %v270_v4, 7  ;;  %v622_v10 = vld [vmem:[%s808_s3 + $0x28] sm:$0xff]  ;;  %v619_v12 = vld [vmem:[%s808_s3 + $0x10] sm:$0xff] }
   0x3   :  { %34 = vbcast.lane.b32.xlu1 %v32_v2, 256  ;;  %v26_v13 = vld [vmem:[%s808_s3] sm:$0xff]  ;;  %v624_v14 = vld [vmem:[%s808_s3 + $0x38] sm:$0xff]  ;;  %v623_v15 = vld [vmem:[%s808_s3 + $0x30] sm:$0xff] }
   0x4   :  { %v272_v6 = vadd.s32 24, %v271_v5  ;;  %v621_v16 = vld [vmem:[%s808_s3 + $0x20] sm:$0xff]  ;;  %v630_v24 = vld [vmem:[%s808_s3 + $0x68] sm:$0xff]  ;;  %v631_v25 = vld [vmem:[%s808_s3 + $0x70] sm:$0xff] }
   0x5   :  { %v629_v19 = vld [vmem:[%s808_s3 + $0x60] sm:$0xff]  ;;  %v632_v26 = vld [vmem:[%s808_s3 + $0x78] sm:$0xff]  ;;  %v626_v32 = vld [vmem:[%s808_s3 + $0x48] sm:$0xff] }
   0x6   :  { %119 = vbcast.lane.b32.xlu0 %v36_v1, 264  ;;  %vm273_vm0 = vcmp.lt.s32.totalorder %v272_v6, 27  ;;  %v625_v31 = vld [vmem:[%s808_s3 + $0x40] sm:$0xff]  ;;  %v627_v33 = vld [vmem:[%s808_s3 + $0x50] sm:$0xff]  ;;  %v628_v34 = vld [vmem:[%s808_s3 + $0x58] sm:$0xff] }
   0x7   :  { %114 = vbcast.lane.b32.xlu1 %v32_v2, 264  ;;  %v274_v40 = vsel %vm273_vm0, %v629_v19, %v12_v0  ;;  %v302_v41 = vsel %vm273_vm0, %v630_v24, %v12_v0  ;;  %v320_v42 = vsel %vm273_vm0, %v631_v25, %v12_v0  ;;  %v338_v43 = vsel %vm273_vm0, %v632_v26, %v12_v0  ;;  %v537_v19 = vld [vmem:[%s806_s1] sm:$0xff] }
   0x8   :  { %v541_v24 = vld [vmem:[%s806_s1 + $0x20] sm:$0xff] }
   0xa   :  { %201 = vbcast.lane.b32.xlu0 %v36_v1, 272 }
   0xb   :  { %283 = vbcast.lane.b32.xlu1 %v36_v1, 280 }
   0xe   :  { %196 = vbcast.lane.b32.xlu0 %v32_v2, 272 }
   0xf   :  { %278 = vbcast.lane.b32.xlu1 %v32_v2, 280 }
  0x74   :  { %v39_v7 = vpop.permute.xlu0 %38 }
  0x75   :  { %v35_v8 = vpop.permute.xlu1 %34  ;;  %v59_v20 = vmax.f32 %v618_v9, %v39_v7  ;;  %v95_v21 = vmax.f32 %v620_v11, %v39_v7  ;;  %v77_v22 = vmax.f32 %v619_v12, %v39_v7  ;;  %v42_v23 = vmax.f32 %v26_v13, %v39_v7  ;;  %v350_v12 = vld [vmem:[%s805_s0] sm:$0xff]  ;;  %v351_v13 = vld [vmem:[%s805_s0 + $0x8] sm:$0xff] }
  0x77   :  { %v63_v45 = vmax.f32 %v59_v20, %v35_v8  ;;  %v99_v46 = vmax.f32 %v95_v21, %v35_v8  ;;  %v81_v47 = vmax.f32 %v77_v22, %v35_v8  ;;  %v46_v48 = vmax.f32 %v42_v23, %v35_v8  ;;  %v539_v21 = vld [vmem:[%s806_s1 + $0x10] sm:$0xff] }
  0x78   :  { %v120_v17 = vpop.permute.xlu0 %119 }
  0x79   :  { %v115_v18 = vpop.permute.xlu1 %114  ;;  %v141_v27 = vmax.f32 %v622_v10, %v120_v17  ;;  %v177_v28 = vmax.f32 %v624_v14, %v120_v17  ;;  %v159_v29 = vmax.f32 %v623_v15, %v120_v17  ;;  %v123_v30 = vmax.f32 %v621_v16, %v120_v17 }
  0x7b   :  { %v145_v35 = vmax.f32 %v141_v27, %v115_v18  ;;  %v181_v36 = vmax.f32 %v177_v28, %v115_v18  ;;  %v163_v37 = vmax.f32 %v159_v29, %v115_v18  ;;  %v127_v38 = vmax.f32 %v123_v30, %v115_v18  ;;  %v543_v28 = vld [vmem:[%s806_s1 + $0x30] sm:$0xff]  ;;  %v542_v30 = vld [vmem:[%s806_s1 + $0x28] sm:$0xff] }
  0x7c   :  { %v202_v39 = vpop.permute.xlu0 %201 }
  0x7d   :  { %v284_v44 = vpop.permute.xlu1 %283  ;;  %v205_v49 = vmax.f32 %v625_v31, %v202_v39  ;;  %v223_v50 = vmax.f32 %v626_v32, %v202_v39  ;;  %v241_v51 = vmax.f32 %v627_v33, %v202_v39  ;;  %v259_v52 = vmax.f32 %v628_v34, %v202_v39  ;;  %v540_v31 = vld [vmem:[%s806_s1 + $0x18] sm:$0xff] }
  0x7e   :  { %v637_v53 = vpack.c.bf16 %v145_v35, %v63_v45  ;;  %v645_v54 = vpack.c.bf16 %v181_v36, %v99_v46  ;;  %v647_v55 = vpack.c.bf16 %v163_v37, %v81_v47  ;;  %v639_v56 = vpack.c.bf16 %v127_v38, %v46_v48  ;;  %v544_v35 = vld [vmem:[%s806_s1 + $0x38] sm:$0xff] }
  0x7f   :  { %v287_v57 = vmax.f32 %v274_v40, %v284_v44  ;;  %v305_v58 = vmax.f32 %v302_v41, %v284_v44  ;;  %v323_v59 = vmax.f32 %v320_v42, %v284_v44  ;;  %v341_v60 = vmax.f32 %v338_v43, %v284_v44 }
  0x80   :  { %v197_v61 = vpop.permute.xlu0 %196  ;;  %638 = vmatprep.subr.bf16.mxu0 %v637_v53  ;;  %646 = vmatprep.subr.bf16.mxu1 %v645_v54 }
  0x81   :  { %v279_v62 = vpop.permute.xlu1 %278  ;;  %v209_v63 = vmax.f32 %v205_v49, %v197_v61  ;;  %v227_v0 = vmax.f32 %v223_v50, %v197_v61  ;;  %v245_v1 = vmax.f32 %v241_v51, %v197_v61  ;;  %v263_v2 = vmax.f32 %v259_v52, %v197_v61  ;;  %648 = vmatpush1.bf16.msra.mxu1 %v647_v55 }
  0x82   :  { %v291_v4 = vmax.f32 %v287_v57, %v279_v62  ;;  %v309_v5 = vmax.f32 %v305_v58, %v279_v62  ;;  %v327_v6 = vmax.f32 %v323_v59, %v279_v62  ;;  %v345_v7 = vmax.f32 %v341_v60, %v279_v62  ;;  %640 = vmatpush1.bf16.msra.mxu0 %v639_v56 }
  0x84   :  { %v641_v8 = vpack.c.bf16 %v309_v5, %v227_v0  ;;  %v643_v9 = vpack.c.bf16 %v291_v4, %v209_v63  ;;  %v651_v10 = vpack.c.bf16 %v327_v6, %v245_v1  ;;  %v649_v11 = vpack.c.bf16 %v345_v7, %v263_v2 }
  0x86   :  { %642 = vmatprep.subr.bf16.mxu0 %v641_v8  ;;  %650 = vmatprep.subr.bf16.mxu1 %v649_v11 }
  0x87   :  { %644 = vmatpush1.bf16.msra.mxu0 %v643_v9  ;;  %652 = vmatpush1.bf16.msra.mxu1 %v651_v10 }
  0x8a   :  { %633 = vmatmul.mubr.msk.f32.vlgmr.msra.gmra.mrb[0].mxu0 %vm368_vm1, %v350_v12  ;;  %635 = vmatmul.mubr.msk.f32.vlgmr.msra.gmra.mrb[0].mxu1 %vm368_vm1, %v350_v12 }
  0x8b   :  { %445 = vmatprep.mubr.f32.mxu0 %v658_v3  ;;  %522 = vmatprep.mubr.f32.mxu1 %v658_v3  ;;  %v538_v3 = vld [vmem:[%s806_s1 + $0x8] sm:$0xff] }
  0x8e   :  { %634 = vmatmul.mubr.msk.f32.gmra.mrb[2].mxu0 %vm368_vm1, %v351_v13  ;;  %636 = vmatmul.mubr.msk.f32.gmra.mrb[2].mxu1 %vm368_vm1, %v351_v13 }
 0x15d   :  { %v441_v14 = vpop.f32.mrb[0].mxu0  ;;  %v518_v15 = vpop.f32.mrb[0].mxu1 }
 0x15e   :  { %v443_v16 = vpop.f32.mrb[1].mxu0  ;;  %v520_v17 = vpop.f32.mrb[1].mxu1  ;;  %v529_v18 = vmax.f32 %v441_v14, 0.0  ;;  %v531_v20 = vmax.f32 %v518_v15, 0.0 }
 0x15f   :  { %v530_v22 = vmax.f32 %v443_v16, 0.0  ;;  %v532_v25 = vmax.f32 %v520_v17, 0.0 }
 0x160   :  { %v545_v36 = vmul.f32 %v537_v19, %v529_v18  ;;  %v547_v39 = vmul.f32 %v539_v21, %v531_v20 }
 0x161   :  { %v447_v23 = vpop.f32.mrb[2].mxu0  ;;  %v524_v27 = vpop.f32.mrb[2].mxu1  ;;  %v546_v40 = vmul.f32 %v538_v3, %v530_v22  ;;  %v548_v43 = vmul.f32 %v540_v31, %v532_v25 }
 0x162   :  { %v533_v26 = vmax.f32 %v447_v23, 0.0  ;;  %v449_v29 = vpop.f32.mrb[3].mxu0  ;;  %v535_v32 = vmax.f32 %v524_v27, 0.0  ;;  %v526_v34 = vpop.f32.mrb[3].mxu1 }
 0x163   :  { %v534_v33 = vmax.f32 %v449_v29, 0.0  ;;  %v536_v38 = vmax.f32 %v526_v34, 0.0 }
 0x164   :  { %v549_v37 = vmul.f32 %v541_v24, %v533_v26  ;;  %v551_v41 = vmul.f32 %v543_v28, %v535_v32 }
 0x165   :  { %v550_v42 = vmul.f32 %v542_v30, %v534_v33  ;;  %v552_v45 = vmul.f32 %v544_v35, %v536_v38  ;;  %v610_v30 = vstv %s807_s2 }
 0x166   :  { %v553_v44 = vadd.f32 %v549_v37, %v545_v36  ;;  %v567_v46 = vadd.f32 %v551_v41, %v547_v39 }
 0x167   :  { %v560_v47 = vadd.f32 %v550_v42, %v546_v40  ;;  %v574_v49 = vadd.f32 %v552_v45, %v548_v43 }
 0x168   :  { %v554_v48 = vrot.slane %v553_v44, 4  ;;  %v568_v50 = vrot.slane %v567_v46, 4 }
 0x169   :  { %v561_v51 = vrot.slane %v560_v47, 4  ;;  %v575_v53 = vrot.slane %v574_v49, 4 }
 0x16a   :  { %v555_v52 = vadd.f32 %v554_v48, %v553_v44  ;;  %v569_v54 = vadd.f32 %v568_v50, %v567_v46 }
 0x16b   :  { %v562_v55 = vadd.f32 %v561_v51, %v560_v47  ;;  %v576_v56 = vadd.f32 %v575_v53, %v574_v49 }
 0x16c   :  { %v556_v57 = vrot.slane %v555_v52, 2  ;;  %v570_v59 = vrot.slane %v569_v54, 2 }
 0x16d   :  { %v563_v58 = vrot.slane %v562_v55, 2  ;;  %v577_v60 = vrot.slane %v576_v56, 2 }
 0x16e   :  { %v557_v61 = vadd.f32 %v556_v57, %v555_v52  ;;  %v571_v62 = vadd.f32 %v570_v59, %v569_v54 }
 0x16f   :  { %v564_v63 = vadd.f32 %v563_v58, %v562_v55  ;;  %v578_v0 = vadd.f32 %v577_v60, %v576_v56 }
 0x170   :  { %v558_v1 = vrot.slane %v557_v61, 1  ;;  %v572_v2 = vrot.slane %v571_v62, 1 }
 0x171   :  { %v565_v4 = vrot.slane %v564_v63, 1  ;;  %v579_v5 = vrot.slane %v578_v0, 1 }
 0x172   :  { %v559_v6 = vadd.f32 %v558_v1, %v557_v61  ;;  %v573_v7 = vadd.f32 %v572_v2, %v571_v62 }
 0x173   :  { %v566_v8 = vadd.f32 %v565_v4, %v564_v63  ;;  %v580_v9 = vadd.f32 %v579_v5, %v578_v0 }
 0x174   :  { %v582_v10 = vsel %vm581_vm2, %v559_v6, 0.0  ;;  %v595_v11 = vsel %vm581_vm2, %v573_v7, 0.0 }
 0x175   :  { %v583_v12 = vsel %vm581_vm2, %v566_v8, 0.0  ;;  %v596_v13 = vsel %vm581_vm2, %v580_v9, 0.0 }
 0x176   :  { %v584_v14 = vadd.f32 %v583_v12, %v582_v10  ;;  %v597_v15 = vadd.f32 %v596_v13, %v595_v11 }
 0x178   :  { %585 = vadd.xlane.f32.xlu0 %v584_v14  ;;  %598 = vadd.xlane.f32.xlu1 %v597_v15 }
 0x205   :  { %v586_v16 = vpop.xlane.xlu0 %585  ;;  %v599_v17 = vpop.xlane.xlu1 %598 }
 0x206   :  { %v587_v18 = vrot.slane %v586_v16, 4  ;;  %v600_v19 = vrot.slane %v599_v17, 4 }
 0x208   :  { %v588_v20 = vadd.f32 %v587_v18, %v586_v16  ;;  %v601_v21 = vadd.f32 %v600_v19, %v599_v17 }
 0x20a   :  { %v589_v22 = vrot.slane %v588_v20, 2  ;;  %v602_v3 = vrot.slane %v601_v21, 2 }
 0x20c   :  { %v590_v23 = vadd.f32 %v589_v22, %v588_v20  ;;  %v603_v24 = vadd.f32 %v602_v3, %v601_v21 }
 0x20e   :  { %v591_v25 = vrot.slane %v590_v23, 1  ;;  %v604_v26 = vrot.slane %v603_v24, 1 }
 0x210   :  { %v592_v27 = vadd.f32 %v591_v25, %v590_v23  ;;  %v605_v28 = vadd.f32 %v604_v26, %v603_v24 }
 0x212   :  { %653 = vpush %v592_v27 }
 0x213   :  { %655 = vpush %v605_v28 }
 0x243   :  { %s654_s1 = spop %653 }
 0x244   :  { %v594_v29 = vstv %s654_s1  ;;  %s656_s28 = spop %655 }
 0x245   :  { %v607_v31 = vstv %s656_s28 }
 0x246   :  { %v608_v32 = vsel %vm581_vm2, %v594_v29, %v607_v31 }
 0x247   :  { %v611_v33 = vadd.f32 %v610_v30, %v608_v32 }
 0x249   :  { %613 = vst.msk [vmem:[%s812_s7] sm:$0x3] %vm612_vm3, %v611_v33 }

</bundles_post_ra>
